<compile_context>
chip_gen: v6e
topology: v6e:2x2x1
jax: 0.10.0
libtpu: 0.0.40
codegen_flags: <defaults>
</compile_context>

<pallas_src>
import functools

import jax
import jax.numpy as jnp
from jax import lax
from jax.experimental import pallas as pl
from jax.experimental.pallas import tpu as pltpu


_INV_SQRT2 = 0.7071067811865476
_VMEM_LIMIT = 64 * 1024 * 1024  # safe cap on v5e/v6e (128 MiB) and v7x (64 MiB)


def _round_up(a, m):
    return ((a + m - 1) // m) * m


# --------------------------------------------------------------------------
# Kernel 1: y = x + Proj(MHSA(LayerNorm1(x)))        (one batch element / step)
# --------------------------------------------------------------------------
def _ln_attn_kernel(x_ref, g_ref, beta_ref, wqkv_ref, bqkv_ref, wproj_ref,
                    bproj_ref, o_ref, *, num_heads, head_dim, scale, eps):
    x = x_ref[...].astype(jnp.float32)                     # (N, C) residual input

    # LayerNorm1 in f32
    mu = jnp.mean(x, axis=-1, keepdims=True)
    var = jnp.mean(jnp.square(x - mu), axis=-1, keepdims=True)
    xn = (x - mu) * lax.rsqrt(var + eps) * g_ref[...] + beta_ref[...]

    # qkv projection: bf16 MXU matmul, f32 accumulation
    qkv = jnp.dot(xn.astype(wqkv_ref.dtype), wqkv_ref[...],
                  preferred_element_type=jnp.float32) + bqkv_ref[...]  # (N, 3*AH)
    ah = num_heads * head_dim

    heads = []
    for h in range(num_heads):                              # static unroll
        lo = h * head_dim
        q = (qkv[:, lo:lo + head_dim] * jnp.float32(scale)).astype(jnp.bfloat16)
        k = qkv[:, ah + lo:ah + lo + head_dim].astype(jnp.bfloat16)
        v = qkv[:, 2 * ah + lo:2 * ah + lo + head_dim].astype(jnp.bfloat16)

        # s = q @ k^T without an explicit transpose
        s = lax.dot_general(q, k, (((1,), (1,)), ((), ())),
                            preferred_element_type=jnp.float32)        # (N, N)
        s = s - jnp.max(s, axis=-1, keepdims=True)
        p = jnp.exp(s)
        p = p / jnp.sum(p, axis=-1, keepdims=True)
        heads.append(jnp.dot(p.astype(jnp.bfloat16), v,
                             preferred_element_type=jnp.float32))       # (N, Dh)

    ctx = jnp.concatenate(heads, axis=-1)                               # (N, AH)
    y = jnp.dot(ctx.astype(wproj_ref.dtype), wproj_ref[...],
                preferred_element_type=jnp.float32) + bproj_ref[...]
    o_ref[...] = (x + y).astype(o_ref.dtype)


def _ln_attn_residual(x, g, b, wqkv, bqkv, wproj, bproj, *,
                      num_heads, scale, eps=1e-5):
    B, N, C = x.shape
    ah3 = wqkv.shape[1]
    ah = ah3 // 3
    head_dim = ah // num_heads

    wqkv_bf = wqkv.astype(jnp.bfloat16)
    wproj_bf = wproj.astype(jnp.bfloat16)
    g2 = g.reshape(1, C).astype(jnp.float32)
    b2 = b.reshape(1, C).astype(jnp.float32)
    bqkv2 = bqkv.reshape(1, ah3).astype(jnp.float32)
    bproj2 = bproj.reshape(1, C).astype(jnp.float32)

    kernel = functools.partial(_ln_attn_kernel, num_heads=num_heads,
                               head_dim=head_dim, scale=scale, eps=eps)

    flops = 2 * B * N * C * ah3 + 4 * B * num_heads * N * N * head_dim \
        + 2 * B * N * ah * C
    cost = pl.CostEstimate(
        flops=int(flops),
        transcendentals=int(B * num_heads * N * N),
        bytes_accessed=int(2 * x.size * 4 + wqkv_bf.size * 2 + wproj_bf.size * 2))

    return pl.pallas_call(
        kernel,
        out_shape=jax.ShapeDtypeStruct((B, N, C), x.dtype),
        grid_spec=pltpu.PrefetchScalarGridSpec(
            num_scalar_prefetch=0,
            grid=(B,),
            in_specs=[
                pl.BlockSpec((None, N, C), lambda i: (i, 0, 0)),   # x (batch squeezed)
                pl.BlockSpec((1, C), lambda i: (0, 0)),            # ln1 gamma
                pl.BlockSpec((1, C), lambda i: (0, 0)),            # ln1 beta
                pl.BlockSpec((C, ah3), lambda i: (0, 0)),          # Wqkv (bf16)
                pl.BlockSpec((1, ah3), lambda i: (0, 0)),          # bqkv
                pl.BlockSpec((ah, C), lambda i: (0, 0)),           # Wproj (bf16)
                pl.BlockSpec((1, C), lambda i: (0, 0)),            # bproj
            ],
            out_specs=pl.BlockSpec((None, N, C), lambda i: (i, 0, 0)),
        ),
        compiler_params=pltpu.CompilerParams(
            dimension_semantics=("parallel",),
            vmem_limit_bytes=_VMEM_LIMIT),
        cost_estimate=cost,
    )(x, g2, b2, wqkv_bf, bqkv2, wproj_bf, bproj2)


# --------------------------------------------------------------------------
# Kernel 2: y = x + fc2(GELU(fc1(LayerNorm2(x))))
#   grid = (row tiles, hidden chunks); hidden axis is a reduction ("arbitrary")
#   accumulated into an f32 VMEM scratch; LayerNorm is computed once per row
#   tile (h == 0) into a bf16 scratch and reused across hidden chunks.
# --------------------------------------------------------------------------
def _ln_mlp_kernel(x_ref, g_ref, beta_ref, w1_ref, b1_ref, w2_ref, b2_ref,
                   o_ref, xn_ref, acc_ref, *, eps):
    h_idx = pl.program_id(1)

    @pl.when(h_idx == 0)
    def _():
        xf = x_ref[...].astype(jnp.float32)
        mu = jnp.mean(xf, axis=-1, keepdims=True)
        var = jnp.mean(jnp.square(xf - mu), axis=-1, keepdims=True)
        xn = (xf - mu) * lax.rsqrt(var + eps) * g_ref[...] + beta_ref[...]
        xn_ref[...] = xn.astype(xn_ref.dtype)               # bf16 for the MXU
        acc_ref[...] = jnp.zeros_like(acc_ref)

    # fc1 chunk: (tm, C) @ (C, th) -> f32
    h1 = jnp.dot(xn_ref[...], w1_ref[...],
                 preferred_element_type=jnp.float32) + b1_ref[...]
    # exact GELU (erf), computed once in f32 on the accumulator
    h1 = 0.5 * h1 * (1.0 + lax.erf(h1 * jnp.float32(_INV_SQRT2)))
    # fc2 chunk: (tm, th) @ (th, C) accumulated in f32
    acc_ref[...] += jnp.dot(h1.astype(w2_ref.dtype), w2_ref[...],
                            preferred_element_type=jnp.float32)

    @pl.when(h_idx == pl.num_programs(1) - 1)
    def _():
        y = acc_ref[...] + b2_ref[...] + x_ref[...].astype(jnp.float32)
        o_ref[...] = y.astype(o_ref.dtype)


def _ln_mlp_residual(x, g, b, w1, b1, w2, b2, *, tm=256, th=512, eps=1e-5):
    B, N, C = x.shape
    H = w1.shape[1]
    C_out = w2.shape[1]
    assert C_out == C, "Block MLP has out_features == dim (residual add)"
    M = B * N

    # --- row tiling: pad instead of asserting M % tm == 0 -----------------
    tm_eff = min(tm, _round_up(M, 8))
    M_pad = _round_up(M, tm_eff)
    x2d = x.reshape(M, C)
    if M_pad != M:
        x2d = jnp.pad(x2d, ((0, M_pad - M), (0, 0)))

    # --- hidden-dimension tiling (keeps weight residency O(th)) ----------
    if H <= th:
        th_eff, H_pad = H, H
    else:
        th_eff = max(128, (th // 128) * 128)     # lane-dim chunks must be 128-aligned
        H_pad = _round_up(H, th_eff)
    if H_pad != H:
        w1 = jnp.pad(w1, ((0, 0), (0, H_pad - H)))
        b1 = jnp.pad(b1, ((0, H_pad - H),))
        w2 = jnp.pad(w2, ((0, H_pad - H), (0, 0)))
    n_h = H_pad // th_eff

    w1_bf = w1.astype(jnp.bfloat16)
    w2_bf = w2.astype(jnp.bfloat16)
    g2 = g.reshape(1, C).astype(jnp.float32)
    bt2 = b.reshape(1, C).astype(jnp.float32)
    b1_2 = b1.reshape(1, H_pad).astype(jnp.float32)
    b2_2 = b2.reshape(1, C).astype(jnp.float32)

    cost = pl.CostEstimate(
        flops=int(2 * M_pad * (C * H_pad + H_pad * C)),
        transcendentals=int(M_pad * H_pad),
        bytes_accessed=int(2 * M_pad * C * 4 + (w1_bf.size + w2_bf.size) * 2
                           + (H_pad + 3 * C) * 4))

    out2d = pl.pallas_call(
        functools.partial(_ln_mlp_kernel, eps=eps),
        out_shape=jax.ShapeDtypeStruct((M_pad, C), x.dtype),
        grid_spec=pltpu.PrefetchScalarGridSpec(
            num_scalar_prefetch=0,
            grid=(M_pad // tm_eff, n_h),
            in_specs=[
                pl.BlockSpec((tm_eff, C), lambda i, h: (i, 0)),       # x rows
                pl.BlockSpec((1, C), lambda i, h: (0, 0)),            # ln2 gamma
                pl.BlockSpec((1, C), lambda i, h: (0, 0)),            # ln2 beta
                pl.BlockSpec((C, th_eff), lambda i, h: (0, h)),       # W1 chunk
                pl.BlockSpec((1, th_eff), lambda i, h: (0, h)),       # b1 chunk
                pl.BlockSpec((th_eff, C), lambda i, h: (h, 0)),       # W2 chunk
                pl.BlockSpec((1, C), lambda i, h: (0, 0)),            # b2
            ],
            out_specs=pl.BlockSpec((tm_eff, C), lambda i, h: (i, 0)),
            scratch_shapes=[
                pltpu.VMEM((tm_eff, C), jnp.bfloat16),                # normalized x
                pltpu.VMEM((tm_eff, C), jnp.float32),                 # f32 accumulator
            ],
        ),
        compiler_params=pltpu.CompilerParams(
            dimension_semantics=("parallel", "arbitrary"),
            vmem_limit_bytes=_VMEM_LIMIT),
        cost_estimate=cost,
    )(x2d, g2, bt2, w1_bf, b1_2, w2_bf, b2_2)

    return out2d[:M].reshape(B, N, C)


# --------------------------------------------------------------------------
# Full Block forward
# --------------------------------------------------------------------------
def vit_block_forward(x, p, *, num_heads, tm=256, th=512, eps=1e-5,
                      qk_scale=None):
    C = x.shape[-1]
    head_dim = (p["wqkv"].shape[1] // 3) // num_heads
    scale = qk_scale if qk_scale is not None else head_dim ** -0.5

    x = _ln_attn_residual(x, p["ln1_g"], p["ln1_b"], p["wqkv"], p["bqkv"],
                          p["wproj"], p["bproj"],
                          num_heads=num_heads, scale=scale, eps=eps)
    x = _ln_mlp_residual(x, p["ln2_g"], p["ln2_b"], p["w1"], p["b1"],
                         p["w2"], p["b2"], tm=tm, th=th, eps=eps)
    return x


# --------------------------------------------------------------------------
# Plain-JAX reference (f32 everywhere) for correctness check
# --------------------------------------------------------------------------
def _reference_block(x, p, *, num_heads, eps=1e-5):
    def ln(z, g, b):
        mu = z.mean(-1, keepdims=True)
        var = ((z - mu) ** 2).mean(-1, keepdims=True)
        return (z - mu) / jnp.sqrt(var + eps) * g + b

    B, N, C = x.shape
    ah = p["wqkv"].shape[1] // 3
    dh = ah // num_heads

    xn = ln(x, p["ln1_g"], p["ln1_b"])
    qkv = xn @ p["wqkv"] + p["bqkv"]
    q, k, v = qkv[..., :ah], qkv[..., ah:2 * ah], qkv[..., 2 * ah:]
    split = lambda t: t.reshape(B, N, num_heads, dh).transpose(0, 2, 1, 3)
    q, k, v = split(q) * dh ** -0.5, split(k), split(v)
    attn = jax.nn.softmax(jnp.einsum("bhqd,bhkd->bhqk", q, k), axis=-1)
    ctx = jnp.einsum("bhqk,bhkd->bhqd", attn, v).transpose(0, 2, 1, 3)
    ctx = ctx.reshape(B, N, ah)
    x = x + ctx @ p["wproj"] + p["bproj"]

    xn2 = ln(x, p["ln2_g"], p["ln2_b"])
    h = xn2 @ p["w1"] + p["b1"]
    h = 0.5 * h * (1.0 + lax.erf(h / jnp.sqrt(2.0)))
    return x + h @ p["w2"] + p["b2"]


if __name__ == "__main__":
    key = jax.random.PRNGKey(0)
    ks = jax.random.split(key, 12)

    B, N, C = 2, 16, 32          # batch, tokens, dim
    num_heads = 4
    hidden = int(C * 4.0)        # mlp_ratio = 4.0

    x = jax.random.normal(ks[0], (B, N, C), jnp.float32)
    params = dict(
        ln1_g=1.0 + 0.1 * jax.random.normal(ks[1], (C,), jnp.float32),
        ln1_b=0.1 * jax.random.normal(ks[2], (C,), jnp.float32),
        wqkv=jax.random.normal(ks[3], (C, 3 * C), jnp.float32) / jnp.sqrt(C),
        bqkv=jnp.zeros((3 * C,), jnp.float32),          # qkv_bias=False
        wproj=jax.random.normal(ks[4], (C, C), jnp.float32) / jnp.sqrt(C),
        bproj=0.02 * jax.random.normal(ks[5], (C,), jnp.float32),
        ln2_g=1.0 + 0.1 * jax.random.normal(ks[6], (C,), jnp.float32),
        ln2_b=0.1 * jax.random.normal(ks[7], (C,), jnp.float32),
        w1=jax.random.normal(ks[8], (C, hidden), jnp.float32) / jnp.sqrt(C),
        b1=0.02 * jax.random.normal(ks[9], (hidden,), jnp.float32),
        w2=jax.random.normal(ks[10], (hidden, C), jnp.float32) / jnp.sqrt(hidden),
        b2=0.02 * jax.random.normal(ks[11], (C,), jnp.float32),
    )

    y = vit_block_forward(x, params, num_heads=num_heads)
    y = jax.block_until_ready(y)

    y_ref = _reference_block(x, params, num_heads=num_heads)
    max_err = float(jnp.max(jnp.abs(y - y_ref)))
    assert jnp.allclose(y, y_ref, atol=5e-2, rtol=5e-2), f"max abs err {max_err}"

    print("KERNEL_OK")
</pallas_src>

<mosaic_0001>
module attributes {stable_mosaic.version = 11 : i64} {
  func.func @_ln_attn_kernel(%arg0: i32, %arg1: memref<1x16x32xf32, #tpu.memory_space<vmem>>, %arg2: memref<1x32xf32, #tpu.memory_space<vmem>>, %arg3: memref<1x32xf32, #tpu.memory_space<vmem>>, %arg4: memref<32x96xbf16, #tpu.memory_space<vmem>>, %arg5: memref<1x96xf32, #tpu.memory_space<vmem>>, %arg6: memref<32x32xbf16, #tpu.memory_space<vmem>>, %arg7: memref<1x32xf32, #tpu.memory_space<vmem>>, %arg8: memref<1x16x32xf32, #tpu.memory_space<vmem>>) attributes {dimension_semantics = [#tpu.dimension_semantics<parallel>], iteration_bounds = array<i64: 2>, scalar_prefetch = 0 : i64, scratch_operands = 0 : i64, tpu.core_type = #tpu.core_type<tc>, window_params = [{transform_indices = @transform_0, window_bounds = array<i64: 1, 16, 32>}, {pipeline_mode = #tpu.pipeline_mode<synchronous>, transform_indices = @transform_1, window_bounds = array<i64: 1, 32>}, {pipeline_mode = #tpu.pipeline_mode<synchronous>, transform_indices = @transform_2, window_bounds = array<i64: 1, 32>}, {pipeline_mode = #tpu.pipeline_mode<synchronous>, transform_indices = @transform_3, window_bounds = array<i64: 32, 96>}, {pipeline_mode = #tpu.pipeline_mode<synchronous>, transform_indices = @transform_4, window_bounds = array<i64: 1, 96>}, {pipeline_mode = #tpu.pipeline_mode<synchronous>, transform_indices = @transform_5, window_bounds = array<i64: 32, 32>}, {pipeline_mode = #tpu.pipeline_mode<synchronous>, transform_indices = @transform_6, window_bounds = array<i64: 1, 32>}, {transform_indices = @transform_7, window_bounds = array<i64: 1, 16, 32>}]} {
    %c0 = arith.constant 0 : index
    %c0_0 = arith.constant 0 : index
    %c0_1 = arith.constant 0 : index
    %0 = vector.load %arg1[%c0, %c0_0, %c0_1] : memref<1x16x32xf32, #tpu.memory_space<vmem>>, vector<1x16x32xf32>
    %1 = vector.shape_cast %0 : vector<1x16x32xf32> to vector<16x32xf32>
    %cst = arith.constant dense<0.000000e+00> : vector<16xf32>
    %2 = vector.multi_reduction <add>, %1, %cst [1] : vector<16x32xf32> to vector<16xf32>
    %3 = vector.shape_cast %2 : vector<16xf32> to vector<16x1xf32>
    %cst_2 = arith.constant 3.200000e+01 : f32
    %4 = vector.broadcast %cst_2 : f32 to vector<16x1xf32>
    %5 = arith.divf %3, %4 : vector<16x1xf32>
    %6 = vector.broadcast %5 : vector<16x1xf32> to vector<16x32xf32>
    %7 = arith.subf %1, %6 : vector<16x32xf32>
    %8 = arith.mulf %7, %7 : vector<16x32xf32>
    %cst_3 = arith.constant dense<0.000000e+00> : vector<16xf32>
    %9 = vector.multi_reduction <add>, %8, %cst_3 [1] : vector<16x32xf32> to vector<16xf32>
    %10 = vector.shape_cast %9 : vector<16xf32> to vector<16x1xf32>
    %cst_4 = arith.constant 3.200000e+01 : f32
    %11 = vector.broadcast %cst_4 : f32 to vector<16x1xf32>
    %12 = arith.divf %10, %11 : vector<16x1xf32>
    %13 = vector.broadcast %5 : vector<16x1xf32> to vector<16x32xf32>
    %14 = arith.subf %1, %13 : vector<16x32xf32>
    %cst_5 = arith.constant 9.99999974E-6 : f32
    %15 = vector.broadcast %cst_5 : f32 to vector<16x1xf32>
    %16 = arith.addf %12, %15 : vector<16x1xf32>
    %17 = math.rsqrt %16 : vector<16x1xf32>
    %18 = vector.broadcast %17 : vector<16x1xf32> to vector<16x32xf32>
    %19 = arith.mulf %14, %18 : vector<16x32xf32>
    %c0_6 = arith.constant 0 : index
    %c0_7 = arith.constant 0 : index
    %20 = vector.load %arg2[%c0_6, %c0_7] : memref<1x32xf32, #tpu.memory_space<vmem>>, vector<1x32xf32>
    %21 = vector.broadcast %20 : vector<1x32xf32> to vector<16x32xf32>
    %22 = arith.mulf %19, %21 : vector<16x32xf32>
    %c0_8 = arith.constant 0 : index
    %c0_9 = arith.constant 0 : index
    %23 = vector.load %arg3[%c0_8, %c0_9] : memref<1x32xf32, #tpu.memory_space<vmem>>, vector<1x32xf32>
    %24 = vector.broadcast %23 : vector<1x32xf32> to vector<16x32xf32>
    %25 = arith.addf %22, %24 : vector<16x32xf32>
    %26 = arith.truncf %25 : vector<16x32xf32> to vector<16x32xbf16>
    %c0_10 = arith.constant 0 : index
    %c0_11 = arith.constant 0 : index
    %27 = vector.load %arg4[%c0_10, %c0_11] : memref<32x96xbf16, #tpu.memory_space<vmem>>, vector<32x96xbf16>
    %cst_12 = arith.constant dense<0.000000e+00> : vector<16x96xf32>
    %28 = tpu.matmul %26, %27, %cst_12 {dimension_numbers = #tpu.dot_dimension_numbers<[1], [0], [0], [1], [0, 0, 1, 1], [], []>} : vector<16x32xbf16>, vector<32x96xbf16>, vector<16x96xf32> -> vector<16x96xf32>
    %c0_13 = arith.constant 0 : index
    %c0_14 = arith.constant 0 : index
    %29 = vector.load %arg5[%c0_13, %c0_14] : memref<1x96xf32, #tpu.memory_space<vmem>>, vector<1x96xf32>
    %30 = vector.broadcast %29 : vector<1x96xf32> to vector<16x96xf32>
    %31 = arith.addf %28, %30 : vector<16x96xf32>
    %32 = vector.extract_strided_slice %31 {offsets = [0, 0], sizes = [16, 8], strides = [1, 1]} : vector<16x96xf32> to vector<16x8xf32>
    %cst_15 = arith.constant 0.353553385 : f32
    %33 = vector.broadcast %cst_15 : f32 to vector<16x8xf32>
    %34 = arith.mulf %32, %33 : vector<16x8xf32>
    %35 = arith.truncf %34 : vector<16x8xf32> to vector<16x8xbf16>
    %36 = vector.extract_strided_slice %31 {offsets = [0, 32], sizes = [16, 8], strides = [1, 1]} : vector<16x96xf32> to vector<16x8xf32>
    %37 = arith.truncf %36 : vector<16x8xf32> to vector<16x8xbf16>
    %38 = vector.extract_strided_slice %31 {offsets = [0, 64], sizes = [16, 8], strides = [1, 1]} : vector<16x96xf32> to vector<16x8xf32>
    %39 = arith.truncf %38 : vector<16x8xf32> to vector<16x8xbf16>
    %cst_16 = arith.constant dense<0.000000e+00> : vector<16x16xf32>
    %40 = tpu.matmul %35, %37, %cst_16 {dimension_numbers = #tpu.dot_dimension_numbers<[1], [1], [0], [0], [0, 0, 1, 0], [], []>} : vector<16x8xbf16>, vector<16x8xbf16>, vector<16x16xf32> -> vector<16x16xf32>
    %cst_17 = arith.constant dense<0xFF800000> : vector<16xf32>
    %41 = vector.multi_reduction <maximumf>, %40, %cst_17 [1] : vector<16x16xf32> to vector<16xf32>
    %42 = vector.shape_cast %41 : vector<16xf32> to vector<16x1xf32>
    %43 = vector.broadcast %42 : vector<16x1xf32> to vector<16x16xf32>
    %44 = arith.subf %40, %43 : vector<16x16xf32>
    %45 = math.exp %44 : vector<16x16xf32>
    %cst_18 = arith.constant dense<0.000000e+00> : vector<16xf32>
    %46 = vector.multi_reduction <add>, %45, %cst_18 [1] : vector<16x16xf32> to vector<16xf32>
    %47 = vector.shape_cast %46 : vector<16xf32> to vector<16x1xf32>
    %48 = vector.broadcast %47 : vector<16x1xf32> to vector<16x16xf32>
    %49 = arith.divf %45, %48 : vector<16x16xf32>
    %50 = arith.truncf %49 : vector<16x16xf32> to vector<16x16xbf16>
    %cst_19 = arith.constant dense<0.000000e+00> : vector<16x8xf32>
    %51 = tpu.matmul %50, %39, %cst_19 {dimension_numbers = #tpu.dot_dimension_numbers<[1], [0], [0], [1], [0, 0, 1, 1], [], []>} : vector<16x16xbf16>, vector<16x8xbf16>, vector<16x8xf32> -> vector<16x8xf32>
    %52 = vector.extract_strided_slice %31 {offsets = [0, 8], sizes = [16, 8], strides = [1, 1]} : vector<16x96xf32> to vector<16x8xf32>
    %cst_20 = arith.constant 0.353553385 : f32
    %53 = vector.broadcast %cst_20 : f32 to vector<16x8xf32>
    %54 = arith.mulf %52, %53 : vector<16x8xf32>
    %55 = arith.truncf %54 : vector<16x8xf32> to vector<16x8xbf16>
    %56 = vector.extract_strided_slice %31 {offsets = [0, 40], sizes = [16, 8], strides = [1, 1]} : vector<16x96xf32> to vector<16x8xf32>
    %57 = arith.truncf %56 : vector<16x8xf32> to vector<16x8xbf16>
    %58 = vector.extract_strided_slice %31 {offsets = [0, 72], sizes = [16, 8], strides = [1, 1]} : vector<16x96xf32> to vector<16x8xf32>
    %59 = arith.truncf %58 : vector<16x8xf32> to vector<16x8xbf16>
    %cst_21 = arith.constant dense<0.000000e+00> : vector<16x16xf32>
    %60 = tpu.matmul %55, %57, %cst_21 {dimension_numbers = #tpu.dot_dimension_numbers<[1], [1], [0], [0], [0, 0, 1, 0], [], []>} : vector<16x8xbf16>, vector<16x8xbf16>, vector<16x16xf32> -> vector<16x16xf32>
    %cst_22 = arith.constant dense<0xFF800000> : vector<16xf32>
    %61 = vector.multi_reduction <maximumf>, %60, %cst_22 [1] : vector<16x16xf32> to vector<16xf32>
    %62 = vector.shape_cast %61 : vector<16xf32> to vector<16x1xf32>
    %63 = vector.broadcast %62 : vector<16x1xf32> to vector<16x16xf32>
    %64 = arith.subf %60, %63 : vector<16x16xf32>
    %65 = math.exp %64 : vector<16x16xf32>
    %cst_23 = arith.constant dense<0.000000e+00> : vector<16xf32>
    %66 = vector.multi_reduction <add>, %65, %cst_23 [1] : vector<16x16xf32> to vector<16xf32>
    %67 = vector.shape_cast %66 : vector<16xf32> to vector<16x1xf32>
    %68 = vector.broadcast %67 : vector<16x1xf32> to vector<16x16xf32>
    %69 = arith.divf %65, %68 : vector<16x16xf32>
    %70 = arith.truncf %69 : vector<16x16xf32> to vector<16x16xbf16>
    %cst_24 = arith.constant dense<0.000000e+00> : vector<16x8xf32>
    %71 = tpu.matmul %70, %59, %cst_24 {dimension_numbers = #tpu.dot_dimension_numbers<[1], [0], [0], [1], [0, 0, 1, 1], [], []>} : vector<16x16xbf16>, vector<16x8xbf16>, vector<16x8xf32> -> vector<16x8xf32>
    %72 = vector.extract_strided_slice %31 {offsets = [0, 16], sizes = [16, 8], strides = [1, 1]} : vector<16x96xf32> to vector<16x8xf32>
    %cst_25 = arith.constant 0.353553385 : f32
    %73 = vector.broadcast %cst_25 : f32 to vector<16x8xf32>
    %74 = arith.mulf %72, %73 : vector<16x8xf32>
    %75 = arith.truncf %74 : vector<16x8xf32> to vector<16x8xbf16>
    %76 = vector.extract_strided_slice %31 {offsets = [0, 48], sizes = [16, 8], strides = [1, 1]} : vector<16x96xf32> to vector<16x8xf32>
    %77 = arith.truncf %76 : vector<16x8xf32> to vector<16x8xbf16>
    %78 = vector.extract_strided_slice %31 {offsets = [0, 80], sizes = [16, 8], strides = [1, 1]} : vector<16x96xf32> to vector<16x8xf32>
    %79 = arith.truncf %78 : vector<16x8xf32> to vector<16x8xbf16>
    %cst_26 = arith.constant dense<0.000000e+00> : vector<16x16xf32>
    %80 = tpu.matmul %75, %77, %cst_26 {dimension_numbers = #tpu.dot_dimension_numbers<[1], [1], [0], [0], [0, 0, 1, 0], [], []>} : vector<16x8xbf16>, vector<16x8xbf16>, vector<16x16xf32> -> vector<16x16xf32>
    %cst_27 = arith.constant dense<0xFF800000> : vector<16xf32>
    %81 = vector.multi_reduction <maximumf>, %80, %cst_27 [1] : vector<16x16xf32> to vector<16xf32>
    %82 = vector.shape_cast %81 : vector<16xf32> to vector<16x1xf32>
    %83 = vector.broadcast %82 : vector<16x1xf32> to vector<16x16xf32>
    %84 = arith.subf %80, %83 : vector<16x16xf32>
    %85 = math.exp %84 : vector<16x16xf32>
    %cst_28 = arith.constant dense<0.000000e+00> : vector<16xf32>
    %86 = vector.multi_reduction <add>, %85, %cst_28 [1] : vector<16x16xf32> to vector<16xf32>
    %87 = vector.shape_cast %86 : vector<16xf32> to vector<16x1xf32>
    %88 = vector.broadcast %87 : vector<16x1xf32> to vector<16x16xf32>
    %89 = arith.divf %85, %88 : vector<16x16xf32>
    %90 = arith.truncf %89 : vector<16x16xf32> to vector<16x16xbf16>
    %cst_29 = arith.constant dense<0.000000e+00> : vector<16x8xf32>
    %91 = tpu.matmul %90, %79, %cst_29 {dimension_numbers = #tpu.dot_dimension_numbers<[1], [0], [0], [1], [0, 0, 1, 1], [], []>} : vector<16x16xbf16>, vector<16x8xbf16>, vector<16x8xf32> -> vector<16x8xf32>
    %92 = vector.extract_strided_slice %31 {offsets = [0, 24], sizes = [16, 8], strides = [1, 1]} : vector<16x96xf32> to vector<16x8xf32>
    %cst_30 = arith.constant 0.353553385 : f32
    %93 = vector.broadcast %cst_30 : f32 to vector<16x8xf32>
    %94 = arith.mulf %92, %93 : vector<16x8xf32>
    %95 = arith.truncf %94 : vector<16x8xf32> to vector<16x8xbf16>
    %96 = vector.extract_strided_slice %31 {offsets = [0, 56], sizes = [16, 8], strides = [1, 1]} : vector<16x96xf32> to vector<16x8xf32>
    %97 = arith.truncf %96 : vector<16x8xf32> to vector<16x8xbf16>
    %98 = vector.extract_strided_slice %31 {offsets = [0, 88], sizes = [16, 8], strides = [1, 1]} : vector<16x96xf32> to vector<16x8xf32>
    %99 = arith.truncf %98 : vector<16x8xf32> to vector<16x8xbf16>
    %cst_31 = arith.constant dense<0.000000e+00> : vector<16x16xf32>
    %100 = tpu.matmul %95, %97, %cst_31 {dimension_numbers = #tpu.dot_dimension_numbers<[1], [1], [0], [0], [0, 0, 1, 0], [], []>} : vector<16x8xbf16>, vector<16x8xbf16>, vector<16x16xf32> -> vector<16x16xf32>
    %cst_32 = arith.constant dense<0xFF800000> : vector<16xf32>
    %101 = vector.multi_reduction <maximumf>, %100, %cst_32 [1] : vector<16x16xf32> to vector<16xf32>
    %102 = vector.shape_cast %101 : vector<16xf32> to vector<16x1xf32>
    %103 = vector.broadcast %102 : vector<16x1xf32> to vector<16x16xf32>
    %104 = arith.subf %100, %103 : vector<16x16xf32>
    %105 = math.exp %104 : vector<16x16xf32>
    %cst_33 = arith.constant dense<0.000000e+00> : vector<16xf32>
    %106 = vector.multi_reduction <add>, %105, %cst_33 [1] : vector<16x16xf32> to vector<16xf32>
    %107 = vector.shape_cast %106 : vector<16xf32> to vector<16x1xf32>
    %108 = vector.broadcast %107 : vector<16x1xf32> to vector<16x16xf32>
    %109 = arith.divf %105, %108 : vector<16x16xf32>
    %110 = arith.truncf %109 : vector<16x16xf32> to vector<16x16xbf16>
    %cst_34 = arith.constant dense<0.000000e+00> : vector<16x8xf32>
    %111 = tpu.matmul %110, %99, %cst_34 {dimension_numbers = #tpu.dot_dimension_numbers<[1], [0], [0], [1], [0, 0, 1, 1], [], []>} : vector<16x16xbf16>, vector<16x8xbf16>, vector<16x8xf32> -> vector<16x8xf32>
    %112 = tpu.concatenate %51, %71, %91, %111 in 1 : vector<16x8xf32>, vector<16x8xf32>, vector<16x8xf32>, vector<16x8xf32> -> vector<16x32xf32>
    %113 = arith.truncf %112 : vector<16x32xf32> to vector<16x32xbf16>
    %c0_35 = arith.constant 0 : index
    %c0_36 = arith.constant 0 : index
    %114 = vector.load %arg6[%c0_35, %c0_36] : memref<32x32xbf16, #tpu.memory_space<vmem>>, vector<32x32xbf16>
    %cst_37 = arith.constant dense<0.000000e+00> : vector<16x32xf32>
    %115 = tpu.matmul %113, %114, %cst_37 {dimension_numbers = #tpu.dot_dimension_numbers<[1], [0], [0], [1], [0, 0, 1, 1], [], []>} : vector<16x32xbf16>, vector<32x32xbf16>, vector<16x32xf32> -> vector<16x32xf32>
    %c0_38 = arith.constant 0 : index
    %c0_39 = arith.constant 0 : index
    %116 = vector.load %arg7[%c0_38, %c0_39] : memref<1x32xf32, #tpu.memory_space<vmem>>, vector<1x32xf32>
    %117 = vector.broadcast %116 : vector<1x32xf32> to vector<16x32xf32>
    %118 = arith.addf %115, %117 : vector<16x32xf32>
    %119 = arith.addf %1, %118 : vector<16x32xf32>
    %c0_40 = arith.constant 0 : index
    %c0_41 = arith.constant 0 : index
    %c0_42 = arith.constant 0 : index
    %120 = vector.load %arg8[%c0_40, %c0_41, %c0_42] : memref<1x16x32xf32, #tpu.memory_space<vmem>>, vector<1x16x32xf32>
    %121 = vector.shape_cast %120 : vector<1x16x32xf32> to vector<16x32xf32>
    %122 = vector.shape_cast %119 : vector<16x32xf32> to vector<1x16x32xf32>
    tpu.vector_store %arg8[%c0_40, %c0_41, %c0_42], %122 {strides = array<i32>} : memref<1x16x32xf32, #tpu.memory_space<vmem>>, vector<1x16x32xf32>,
    return
  }
  func.func @transform_0(%arg0: i32) -> (i32, i32, i32) {
    %c0_i32 = arith.constant 0 : i32
    %c0_i32_0 = arith.constant 0 : i32
    %c0_i32_1 = arith.constant 0 : i32
    return %arg0, %c0_i32, %c0_i32_0 : i32, i32, i32
  }
  func.func @transform_1(%arg0: i32) -> (i32, i32) {
    %c0_i32 = arith.constant 0 : i32
    %c0_i32_0 = arith.constant 0 : i32
    %c0_i32_1 = arith.constant 0 : i32
    return %c0_i32, %c0_i32_0 : i32, i32
  }
  func.func @transform_2(%arg0: i32) -> (i32, i32) {
    %c0_i32 = arith.constant 0 : i32
    %c0_i32_0 = arith.constant 0 : i32
    %c0_i32_1 = arith.constant 0 : i32
    return %c0_i32, %c0_i32_0 : i32, i32
  }
  func.func @transform_3(%arg0: i32) -> (i32, i32) {
    %c0_i32 = arith.constant 0 : i32
    %c0_i32_0 = arith.constant 0 : i32
    %c0_i32_1 = arith.constant 0 : i32
    return %c0_i32, %c0_i32_0 : i32, i32
  }
  func.func @transform_4(%arg0: i32) -> (i32, i32) {
    %c0_i32 = arith.constant 0 : i32
    %c0_i32_0 = arith.constant 0 : i32
    %c0_i32_1 = arith.constant 0 : i32
    return %c0_i32, %c0_i32_0 : i32, i32
  }
  func.func @transform_5(%arg0: i32) -> (i32, i32) {
    %c0_i32 = arith.constant 0 : i32
    %c0_i32_0 = arith.constant 0 : i32
    %c0_i32_1 = arith.constant 0 : i32
    return %c0_i32, %c0_i32_0 : i32, i32
  }
  func.func @transform_6(%arg0: i32) -> (i32, i32) {
    %c0_i32 = arith.constant 0 : i32
    %c0_i32_0 = arith.constant 0 : i32
    %c0_i32_1 = arith.constant 0 : i32
    return %c0_i32, %c0_i32_0 : i32, i32
  }
  func.func @transform_7(%arg0: i32) -> (i32, i32, i32) {
    %c0_i32 = arith.constant 0 : i32
    %c0_i32_0 = arith.constant 0 : i32
    %c0_i32_1 = arith.constant 0 : i32
    return %arg0, %c0_i32, %c0_i32_0 : i32, i32, i32
  }
}

</mosaic_0001>

<bundles_post_ra>
// kernel: tpu_custom_call.1
= control target key start
LH: loop header
LB: loop body
LE: loop exit
PB: predicated region body
PF: predicated region fallthrough
CT: control target
= control target key end

     0   :  { %s1922_s0 = inlined_call_operand.hbm [shape: f32[2,16,32], index: 0, kind: input, shape index: {}]   ;;  %s1923_s1 = inlined_call_operand.vmem [shape: f32[1,32], index: 1, kind: input, shape index: {}]   ;;  %s1924_s2 = inlined_call_operand.vmem [shape: f32[1,32], index: 2, kind: input, shape index: {}]   ;;  %s1925_s3 = inlined_call_operand.hbm [shape: bf16[32,96], index: 3, kind: input, shape index: {}]   ;;  %s1926_s4 = inlined_call_operand.vmem [shape: f32[1,96], index: 4, kind: input, shape index: {}]   ;;  %s1927_s5 = inlined_call_operand.hbm [shape: bf16[32,32], index: 5, kind: input, shape index: {}]   ;;  %s1928_s6 = inlined_call_operand.vmem [shape: f32[1,32], index: 6, kind: input, shape index: {}]   ;;  %s1929_s7 = inlined_call_operand.hbm [shape: f32[2,16,32], index: 7, kind: output, shape index: {}]  }
   0x1   :  { %1934 = sst [smem:[#allocation12_spill]] %s1925_s3 }
   0x2   :  { %12 = vsyncpa [#allocation3], 0 }
   0x3   :  { %14 = vsyncpa [#allocation3 + $0x1], 0 }
   0x4   :  { %15 = vsyncpa [#allocation6], 0 }
   0x5   :  { %16 = vsyncpa [#allocation4], 0 }
   0x6   :  { %18 = vsyncpa [#allocation4 + $0x1], 0  ;;  %s1624_s24 = smov 0   ;;  %s1626_s25 = smov 0  }
   0x7   :  { %s1628_s26 = smov 0   ;;  %s1630_s27 = smov 0  }
   0x8 LB: > { %s1645_s28 = sadd.s32 4294967295, %s1557_s27   ;;  %s1142_s29 = sadd.s32 4294967294, %s1557_s27   ;;  %s1557_s27 = sphi %s1630_s27, %s1953_s27   ;;  %s1553_s26 = sphi %s1628_s26, %s1952_s26   ;;  %s1549_s25 = sphi %s1626_s25, %s1951_s25   ;;  %s1545_s24 = sphi %s1624_s24, %s1950_s24  }
   0x9   : > { %p44_p0 = scmp.ne.s32.totalorder %s1549_s25, %s1545_s24  ;;  %p1930_p1 = scmp.eq.s32.totalorder %s1645_s28, 0 }
   0xa   : > { %p200_p3 = scmp.eq.s32.totalorder %s1142_s29, 1  ;;  %p1143_p5 = scmp.ge.s32.totalorder %s1557_s27, 1 }
   0xb   : > { %p1654_p4 = por %p1930_p1, %p44_p0  ;;  %p207_p7 = scmp.lt.s32.totalorder %s1557_s27, 3 }
   0xc   : > { %p1659_p6 = por %p200_p3, %p44_p0  ;;  %s1559_s10 = smov [#allocation5]  }
   0xd   : > { %s1935_s30 = scalar_select %p1654_p4, 1, 0 }
   0xe   : > { %s1936_s8 = scalar_select %p1659_p6, 1, 0 }
   0xf   : > { %p1664_p8 = pnand %p1143_p5, %p207_p7  ;;  %s225_s11 = sshll.u32 %s1559_s10, 4  ;;  %s226_s11 = int_to_ptr.vmem [resolvable:$true] %s225_s11 }
  0x10   : > { %s1560_s13 = smov [#allocation7]   ;;  %s1420_s15 = scalar_lea.vmem %s226_s11, 256 }
  0x11   : > { %s1937_s9 = scalar_select %p1664_p8, 1, 0 }
  0x12   : > { %p1278_p9 = pneg %p1664_p8  ;;  %s241_s14 = sshll.u32 %s1560_s13, 4  ;;  %s242_s14 = int_to_ptr.vmem [resolvable:$true] %s241_s14 }
  0x13   : > { %p1421_p13 = scmp.ne.s32.totalorder %s226_s11, %s1420_s15  ;;  %p1428_p5 = scmp.lt.s32.totalorder %s226_s11, %s226_s11 }
  0x14   : > { %p1673_p11 = pnand %p1278_p9, %p1930_p1  ;;  %p1429_p7 = scmp.lt.s32.totalorder %s1420_s15, %s1420_s15 }
  0x16   : > { %p1411_p12 = pneg %p1673_p11  ;;  %p1430_p10 = por %p1429_p7, %p1428_p5 }
  0x18   : > { %p1423_p0 = pnand %p1421_p13, %p1411_p12 }
  0x1a   : > { %p1424_p3 = pneg %p1423_p0 }
  0x1c   : > { %p1431_p9 = pnand %p1430_p10, %p1424_p3 }
  0x1e   : > { %1434 = shalt.err (!%p1431_p9)
}
  0x1f   : > { %s1561_s16 = smov 64   ;;  %s1562_s17 = smov 4  }
  0x20   : > { %s1939_s3 = sld [smem:[#allocation12_spill]]  ;;  %s1446_s20 = scalar_lea.vmem %s242_s14, 256 }
  0x21   : > { %p1447_p1 = scmp.ne.s32.totalorder %s242_s14, %s1446_s20  ;;  %p1454_p2 = scmp.lt.s32.totalorder %s242_s14, %s242_s14 }
  0x22   : > { %p1455_p6 = scmp.lt.s32.totalorder %s1446_s20, %s1446_s20 }
  0x23   : > { %p1449_p13 = pnand %p1447_p1, %p1411_p12 }
  0x24   : > { %p1456_p5 = por %p1455_p6, %p1454_p2 }
  0x25   : > { %p1450_p0 = pneg %p1449_p13 }
  0x26   : > { %1281 = dma.hbm_to_vmem [thread:$0]  (!%p1673_p11), %s1939_s3, 256, %s226_s11, [#allocation6], %s1561_s16, %s1561_s16, %s1562_s17  }
  0x27   : > { %p1457_p10 = pnand %p1456_p5, %p1450_p0 }
  0x29   : > { %1460 = shalt.err (!%p1457_p10)
}
  0x2a   : > { %1284 = dma.hbm_to_vmem [thread:$0]  (!%p1673_p11), %s1927_s5, 256, %s242_s14, [#allocation6], %s1561_s16, %s1561_s16, %s1562_s17  }
  0x2b   : > { %s1696_s23 = sadd.s32 1, %s1557_s27   ;;  %s31_s29 = sadd.s32 1, %s1553_s26 }
  0x2c   : > { %s28_s10 = ssub.s32 %s1557_s27, %s1696_s23  ;;  %p38_p1 = scmp.ne.s32.totalorder %s1553_s26, %s1549_s25 }
  0x2d   : > { %p29_p2 = scmp.eq.s32.totalorder %s28_s10, 0  ;;  %p39_p6 = scmp.eq.s32.totalorder %s1557_s27, 0 }
  0x2e   : > { %p1940_p12 = scmp.eq.s32.totalorder %s1645_s28, 1  ;;  %p1295_p7 = scmp.lt.s32.totalorder %s1557_s27, 2 }
  0x2f   : > { %s1712_s12 = scalar_select %p29_p2, %s1553_s26, %s31_s29  }
  0x30   : > { %p1706_p3 = por %p1940_p12, %p38_p1  ;;  %p40_p9 = por %p39_p6, %p38_p1 }
  0x31   : > { %s258_s13 = sand.u32 1, %s1553_s26   ;;  %s1178_s14 = sshll.u32 %s1557_s27, 8 }
  0x32   : > { %s1941_s11 = scalar_select %p1706_p3, 1, 0 }
  0x33   : > { %s1147_s15 = sshll.u32 %s258_s13, 4  ;;  %s1719_s18 = scalar_lea.hbm %s1922_s0, %s1178_s14 }
  0x34   : > { %s262_s19 = scalar_lea.vmem [#allocation2], %s1147_s15  ;;  %p1723_p11 = pnand %p1295_p7, %p40_p9 }
  0x35   : > { %s269_s20 = sshll.u32 %s262_s19, 4  ;;  %s1727_s22 = scalar_lea.sflag [#allocation3], %s258_s13  ;;  %s1721_s20 = int_to_ptr.vmem [resolvable:$true] %s269_s20 }
  0x36   : > { %s1461_s29 = scalar_lea.hbm %s1719_s18, 256  ;;  %p1463_p0 = pneg %p1723_p11 }
  0x37   : > { %p1462_p13 = scmp.ne.s32.totalorder %s1719_s18, %s1461_s29  ;;  %s1466_s15 = scalar_lea.hbm %s1922_s0, 512 }
  0x38   : > { %p1467_p1 = scmp.lt.s32.totalorder %s1719_s18, %s1922_s0  ;;  %p1468_p2 = scmp.lt.s32.totalorder %s1466_s15, %s1461_s29 }
  0x39   : > { %p1464_p5 = pnand %p1463_p0, %p1462_p13 }
  0x3a   : > { %p1469_p6 = por %p1468_p2, %p1467_p1 }
  0x3b   : > { %p1465_p10 = pneg %p1464_p5 }
  0x3d   : > { %p1470_p12 = pnand %p1469_p6, %p1465_p10 }
  0x3f   : > { %1473 = shalt.err (!%p1470_p12)
}
  0x40   : > { %s1474_s13 = scalar_lea.vmem %s1721_s20, 256  ;;  %s1563_s19 = smov [#allocation2]  }
  0x41   : > { %p1475_p7 = scmp.ne.s32.totalorder %s1721_s20, %s1474_s13  ;;  %s1479_s3 = sshll.u32 %s1563_s19, 4  ;;  %s1480_s3 = int_to_ptr.vmem [resolvable:$false] %s1479_s3 }
  0x42   : > { %s1481_s10 = scalar_lea.vmem %s1480_s3, 512  ;;  %p1482_p5 = scmp.lt.s32.totalorder %s1721_s20, %s1480_s3 }
  0x43   : > { %p1477_p9 = pnand %p1475_p7, %p1463_p0  ;;  %p1483_p3 = scmp.lt.s32.totalorder %s1481_s10, %s1474_s13 }
  0x45   : > { %p1478_p13 = pneg %p1477_p9  ;;  %p1484_p4 = por %p1483_p3, %p1482_p5 }
  0x47   : > { %p1485_p8 = pnand %p1484_p4, %p1478_p13 }
  0x49   : > { %1488 = shalt.err (!%p1485_p8)
}
  0x4a   : > { %s1564_s29 = smov 128   ;;  %s1565_s14 = smov 8  }
  0x4b   : > { %1288 = dma.hbm_to_vmem [thread:$0]  (!%p1723_p11), %s1719_s18, 256, %s1721_s20, %s1727_s22, %s1564_s29, %s1564_s29, %s1565_s14  }
  0x4c   : > { %p1943_p0 = scmp.ne.s32.totalorder %s1937_s9, 0 }
  0x4d   : > { %s1751_s15 = sand.u32 (!%p1943_p0), 1, %s1549_s25   ;;  %p1944_p4 = scmp.ne.s32.totalorder (!%p1943_p0), %s1935_s30, 0 }
  0x4e   : > { %281 = sbr.rel (%p1943_p0) target bundleno = 1800 (0x708), region = 48  ;;  %s1151_s3 = sshll.u32 (!%p1943_p0), %s1751_s15, 4 }
  0x4f   : > { %s284_s16 = scalar_lea.sflag (!%p1943_p0), [#allocation3], %s1751_s15  ;;  %s287_s17 = scalar_lea.vmem (!%p1943_p0), [#allocation2], %s1151_s3 }
  0x53   : > { %1532 = dma.done.wait (%p1944_p4), %s284_s16, 256  }
  0x54   : > { %1534 = vsyncadd (%p1944_p4), %s284_s16, 4294967040  ;;  %p1945_p8 = scmp.eq.s32.totalorder %s1645_s28, 0 }
  0x56   : > { %1536 = dma.done.wait (%p1945_p8), [#allocation6], 512   ;;  %p1946_p3 = pmov %p1945_p8 }
  0x57   : > { %vm329_vm0 = vcmask 261120   ;;  %v1765_v0 = vld [vmem:[%s287_s17] sm:$0xff]  ;;  %v1767_v1 = vld [vmem:[%s287_s17 + $0x8] sm:$0xff]  ;;  %v1566_v15 = vmov 0.0   ;;  %vm1567_vm1 = vmmov 0   ;;  %s1568_s13 = smov 88  }
  0x58   : > { %1538 = vsyncadd (%p1946_p3), [#allocation6], 4294966784  ;;  %v330_v2 = vsel %vm329_vm0, %v1765_v0, 0.0  ;;  %v333_v3 = vsel %vm329_vm0, %v1767_v1, 0.0  ;;  %v1369_v14 = vld [vmem:[#allocation5 + $0x8] sm:$0xff]   ;;  %1202 = vmatprep.subr.bf16.mxu0 %v1566_v15  ;;  %1206 = vmatprep.mubr.msk.bf16.mxu0 %vm1567_vm1, %v1566_v15  ;;  %v1370_v16 = vld [vmem:[#allocation5] sm:$0xff]  }
  0x59   : > { %331 = vadd.xlane.f32.xlu0 %v330_v2  ;;  %1203 = vmatpush3.bf16.msra.mxu0 %v1369_v14  ;;  %v1155_v25 = vld [vmem:[%s1923_s1] ss:$0 sm:$0xff]  ;;  %s1569_s19 = smov 96   ;;  %s1570_s10 = smov 112   ;;  %vm450_vm2 = vcmask 64512   ;;  %vm498_vm3 = vcmask 130048  }
  0x5a   : > { %1210 = vmatprep.subr.bf16.mxu1 %v1566_v15  ;;  %1204 = vmatprep.subr.bf16.mxu0 %v1566_v15  ;;  %v1156_v29 = vld [vmem:[%s1924_s2] ss:$0 sm:$0xff]  ;;  %s1571_s29 = smov 120   ;;  %s1572_s14 = smov 104   ;;  %vm961_vm4 = vcmask 195584  }
  0x5b   : > { %1212 = vmatprep.mubr.msk.bf16.mxu1 %vm1567_vm1, %v1566_v15  ;;  %v1157_v35 = vld [vmem:[%s1926_s4] ss:$0 sm:$0xff]  ;;  %s1573_s16 = smov 80   ;;  %s1574_s17 = smov 72  }
  0x5c   : > { %s1575_s30 = smov 64   ;;  %s1576_s9 = smov 48  }
  0x5d   : > { %334 = vadd.xlane.f32.xlu0 %v333_v3  ;;  %1205 = vmatpush3.bf16.msra.mxu0 %v1370_v16  ;;  %s1577_s18 = smov 40   ;;  %s1578_s20 = smov 56  }
  0x5e   : > { %1216 = vmatprep.subr.bf16.mxu0 %v1566_v15  ;;  %s1579_s21 = smov 8   ;;  %s1580_s22 = smov 16  }
  0x5f   : > { %p1947_p10 = scmp.ne.s32.totalorder %s1941_s11, 0 }
  0xe2   : > { %v332_v4 = vpop.xlane.xlu0 %331 }
  0xe3   : > { %v337_v5 = vmul.f32 0.03125, %v332_v4 }
  0xe5   : > { %v339_v6 = vsub.f32 %v1765_v0, %v337_v5 }
  0xe6   : > { %v335_v7 = vpop.xlane.xlu0 %334 }
  0xe7   : > { %v338_v8 = vmul.f32 0.03125, %v335_v7  ;;  %v341_v9 = vmul.f32 %v339_v6, %v339_v6 }
  0xe9   : > { %v340_v10 = vsub.f32 %v1767_v1, %v338_v8  ;;  %v343_v11 = vsel %vm329_vm0, %v341_v9, 0.0 }
  0xea   : > { %344 = vadd.xlane.f32.xlu1 %v343_v11 }
  0xeb   : > { %v342_v12 = vmul.f32 %v340_v10, %v340_v10 }
  0xed   : > { %v346_v13 = vsel %vm329_vm0, %v342_v12, 0.0 }
  0xee   : > { %347 = vadd.xlane.f32.xlu1 %v346_v13 }
 0x173   : > { %v345_v17 = vpop.xlane.xlu1 %344 }
 0x174   : > { %v349_v18 = vmul.f32 0.03125, %v345_v17 }
 0x176   : > { %v351_v19 = vadd.f32 1e-05, %v349_v18 }
 0x177   : > { %v348_v20 = vpop.xlane.xlu1 %347 }
 0x178   : > { %1373 = vrsqrt.f32 %v351_v19  ;;  %v350_v21 = vmul.f32 0.03125, %v348_v20 }
 0x17a   : > { %v352_v22 = vadd.f32 1e-05, %v350_v21 }
 0x17c   : > { %1375 = vrsqrt.f32 %v352_v22 }
 0x185   : > { %v1374_v23 = vpop.eup %1373 }
 0x186   : > { %v355_v24 = vmul.f32 %v1374_v23, %v339_v6 }
 0x188   : > { %v364_v28 = vmul.f32 %v1155_v25, %v355_v24 }
 0x189   : > { %v1376_v26 = vpop.eup %1375 }
 0x18a   : > { %v356_v27 = vmul.f32 %v1376_v26, %v340_v10  ;;  %v373_v31 = vadd.f32 %v1156_v29, %v364_v28 }
 0x18c   : > { %v365_v30 = vmul.f32 %v1155_v25, %v356_v27 }
 0x18e   : > { %v374_v32 = vadd.f32 %v1156_v29, %v365_v30 }
 0x190   : > { %v375_v33 = vpack.c.bf16 %v374_v32, %v373_v31 }
 0x192   : > { %1207 = vmatmul.mubr.msk.bf16.vlgmr.msra.gmra.mxu0 %vm329_vm0, %v375_v33 }
 0x193   : > { %1218 = vmatprep.mubr.msk.bf16.mxu0 %vm1567_vm1, %v1566_v15 }
 0x252   : > { %v436_v34 = vpop.f32.mrf.mxu0 }
 0x253   : > { %v437_v38 = vadd.f32 %v1157_v35, %v436_v34 }
 0x254   : > { %v1208_v36 = vpop.f32.mrf.mxu0 }
 0x255   : > { %v443_v43 = vmul.f32 0.35355338, %v437_v38 }
 0x256   : > { %v439_v37 = vpop.f32.mrf.mxu0 }
 0x257   : > { %v440_v39 = vadd.f32 %v1157_v35, %v439_v37 }
 0x258   : > { %v1209_v40 = vpop.f32.mrf.mxu0 }
 0x259   : > { %v444_v41 = vmul.f32 0.35355338, %v440_v39  ;;  %v1797_v42 = vpack.c.bf16 %v440_v39, %v437_v38 }
 0x25b   : > { %572 = vrot.lane.b32.xlu1 %v1797_v42, %s1568_s13  ;;  %448 = vrot.lane.b32.xlu0 %v1797_v42, %s1569_s19  ;;  %v445_v44 = vpack.c.bf16 %v444_v41, %v443_v43  ;;  %s1581_s13 = smov 24  }
 0x25f   : > { %691 = vrot.lane.b32.xlu0 %v445_v44, %s1570_s10  ;;  %570 = vrot.lane.b32.xlu1 %v445_v44, %s1571_s29  ;;  %s1179_s29 = sshll.u32 %s1645_s28, 8  ;;  %s1037_s28 = scalar_lea.sflag [#allocation4], %s1751_s15 }
 0x263   : > { %812 = vrot.lane.b32.xlu0 %v445_v44, %s1572_s14  ;;  %693 = vrot.lane.b32.xlu1 %v1797_v42, %s1573_s16  ;;  %s325_s14 = scalar_lea.vmem [#allocation8], %s1151_s3 }
 0x264   : > { %s1050_s16 = sshll.u32 %s325_s14, 4  ;;  %s1877_s16 = int_to_ptr.vmem [resolvable:$true] %s1050_s16 }
 0x265   : > { %s1489_s3 = scalar_lea.vmem %s1877_s16, 256 }
 0x266   : > { %p1490_p11 = scmp.ne.s32.totalorder %s1877_s16, %s1489_s3 }
 0x267   : > { %814 = vrot.lane.b32.xlu1 %v1797_v42, %s1574_s17 }
 0x268   : > { %p1491_p1 = pnand %p1490_p11, %p1947_p10 }
 0x26a   : > { %p1492_p2 = pneg %p1491_p1 }
 0x2cd   : > { %v449_v45 = vpop.permute.xlu0 %448  ;;  %v573_v47 = vpop.permute.xlu1 %572 }
 0x2ce   : > { %v455_v46 = vsel %vm450_vm2, %v449_v45, 0  ;;  %v578_v49 = vsel %vm450_vm2, %v573_v47, 0 }
 0x2cf   : > { %1211 = vmatpush3.bf16.xpose.msra.mxu1 %v455_v46 }
 0x2d0   : > { %1222 = vmatprep.subr.bf16.mxu1 %v1566_v15 }
 0x2d1   : > { %v571_v48 = vpop.permute.xlu1 %570  ;;  %v692_v53 = vpop.permute.xlu0 %691 }
 0x2d5   : > { %v694_v50 = vpop.permute.xlu1 %693  ;;  %v813_v55 = vpop.permute.xlu0 %812 }
 0x2d6   : > { %1213 = vmatmul.mubr.msk.bf16.vlgmr.msra.gmra.mxu1 %vm450_vm2, %v445_v44  ;;  %v699_v51 = vsel %vm450_vm2, %v694_v50, 0 }
 0x2d7   : > { %1223 = vmatpush3.bf16.xpose.msra.mxu1 %v578_v49  ;;  %1224 = vmatprep.mubr.msk.bf16.mxu1 %vm1567_vm1, %v1566_v15 }
 0x2d8   : > { %1234 = vmatprep.subr.bf16.mxu1 %v1566_v15 }
 0x2d9   : > { %v815_v52 = vpop.permute.xlu1 %814 }
 0x2da   : > { %v820_v54 = vsel %vm450_vm2, %v815_v52, 0 }
 0x2de   : > { %1225 = vmatmul.mubr.msk.bf16.vlgmr.msra.gmra.mxu1 %vm450_vm2, %v571_v48 }
 0x2df   : > { %1235 = vmatpush3.bf16.xpose.msra.mxu1 %v699_v51  ;;  %1236 = vmatprep.mubr.msk.bf16.mxu1 %vm1567_vm1, %v1566_v15 }
 0x2e0   : > { %1246 = vmatprep.subr.bf16.mxu1 %v1566_v15 }
 0x2e6   : > { %1237 = vmatmul.mubr.msk.bf16.vlgmr.msra.gmra.mxu1 %vm450_vm2, %v692_v53 }
 0x2e7   : > { %1247 = vmatpush3.bf16.xpose.msra.mxu1 %v820_v54  ;;  %1248 = vmatprep.mubr.msk.bf16.mxu1 %vm1567_vm1, %v1566_v15 }
 0x2e8   : > { %1258 = vmatprep.subr.bf16.mxu1 %v1566_v15 }
 0x2ee   : > { %1249 = vmatmul.mubr.msk.bf16.vlgmr.msra.gmra.mxu1 %vm450_vm2, %v813_v55 }
 0x2ef   : > { %1262 = vmatprep.mubr.msk.bf16.mxu1 %vm1567_vm1, %v1566_v15 }
 0x396   : > { %v491_v56 = vpop.f32.mrf.mxu1 }
 0x397   : > { %v499_v57 = vsel %vm498_vm3, %v491_v56, -inf }
 0x398   : > { %500 = vmax.xlane.f32.xlu1 %v499_v57  ;;  %v1214_v58 = vpop.f32.mrf.mxu1 }
 0x39a   : > { %v494_v59 = vpop.f32.mrf.mxu1 }
 0x39b   : > { %v502_v60 = vsel %vm498_vm3, %v494_v59, -inf }
 0x39c   : > { %503 = vmax.xlane.f32.xlu0 %v502_v60  ;;  %v1215_v61 = vpop.f32.mrf.mxu1 }
 0x39e   : > { %v614_v62 = vpop.f32.mrf.mxu1 }
 0x39f   : > { %v621_v63 = vsel %vm498_vm3, %v614_v62, -inf }
 0x3a0   : > { %622 = vmax.xlane.f32.xlu0 %v621_v63  ;;  %v1226_v2 = vpop.f32.mrf.mxu1 }
 0x3a2   : > { %v617_v3 = vpop.f32.mrf.mxu1 }
 0x3a3   : > { %v624_v4 = vsel %vm498_vm3, %v617_v3, -inf }
 0x3a4   : > { %625 = vmax.xlane.f32.xlu0 %v624_v4  ;;  %v1227_v5 = vpop.f32.mrf.mxu1 }
 0x3a6   : > { %v735_v6 = vpop.f32.mrf.mxu1 }
 0x3a7   : > { %v742_v7 = vsel %vm498_vm3, %v735_v6, -inf }
 0x3a8   : > { %743 = vmax.xlane.f32.xlu1 %v742_v7  ;;  %v1238_v8 = vpop.f32.mrf.mxu1 }
 0x3aa   : > { %v738_v9 = vpop.f32.mrf.mxu1 }
 0x3ab   : > { %v745_v10 = vsel %vm498_vm3, %v738_v9, -inf }
 0x3ac   : > { %746 = vmax.xlane.f32.xlu0 %v745_v10  ;;  %v1239_v11 = vpop.f32.mrf.mxu1 }
 0x3ae   : > { %v856_v12 = vpop.f32.mrf.mxu1 }
 0x3af   : > { %v863_v13 = vsel %vm498_vm3, %v856_v12, -inf }
 0x3b0   : > { %864 = vmax.xlane.f32.xlu1 %v863_v13  ;;  %v1250_v14 = vpop.f32.mrf.mxu1 }
 0x3b2   : > { %v859_v16 = vpop.f32.mrf.mxu1 }
 0x3b3   : > { %v866_v17 = vsel %vm498_vm3, %v859_v16, -inf }
 0x3b4   : > { %867 = vmax.xlane.f32.xlu0 %v866_v17  ;;  %v1251_v18 = vpop.f32.mrf.mxu1 }
 0x3c1   : > { %522 = vrot.lane.b32.xlu1 %v1797_v42, %s1575_s30 }
 0x421   : > { %v501_v19 = vpop.xlane.xlu1 %500 }
 0x422   : > { %v505_v20 = vsub.f32 %v491_v56, %v501_v19 }
 0x424   : > { %v507_v21 = vmul.f32 1.442695, %v505_v20 }
 0x425   : > { %v504_v22 = vpop.xlane.xlu0 %503 }
 0x426   : > { %1377 = vpow2.f32 %v507_v21  ;;  %v506_v23 = vsub.f32 %v494_v59, %v504_v22 }
 0x428   : > { %v509_v24 = vmul.f32 1.442695, %v506_v23 }
 0x429   : > { %v623_v25 = vpop.xlane.xlu0 %622 }
 0x42a   : > { %1379 = vpow2.f32 %v509_v24  ;;  %v627_v26 = vsub.f32 %v614_v62, %v623_v25 }
 0x42c   : > { %v629_v27 = vmul.f32 1.442695, %v627_v26 }
 0x42d   : > { %v626_v28 = vpop.xlane.xlu0 %625 }
 0x42e   : > { %1381 = vpow2.f32 %v629_v27  ;;  %v628_v29 = vsub.f32 %v617_v3, %v626_v28 }
 0x430   : > { %v631_v30 = vmul.f32 1.442695, %v628_v29 }
 0x431   : > { %v744_v31 = vpop.xlane.xlu1 %743 }
 0x432   : > { %1383 = vpow2.f32 %v631_v30  ;;  %v748_v32 = vsub.f32 %v735_v6, %v744_v31 }
 0x433   : > { %v1378_v33 = vpop.eup %1377 }
 0x434   : > { %v750_v34 = vmul.f32 1.442695, %v748_v32  ;;  %v511_v35 = vsel %vm498_vm3, %v1378_v33, 0.0 }
 0x435   : > { %v747_v36 = vpop.xlane.xlu0 %746  ;;  %512 = vadd.xlane.f32.xlu1 %v511_v35 }
 0x436   : > { %1385 = vpow2.f32 %v750_v34  ;;  %v749_v37 = vsub.f32 %v738_v9, %v747_v36 }
 0x437   : > { %v1380_v38 = vpop.eup %1379 }
 0x438   : > { %v752_v39 = vmul.f32 1.442695, %v749_v37  ;;  %v514_v40 = vsel %vm498_vm3, %v1380_v38, 0.0  ;;  %v1371_v37 = vld [vmem:[#allocation7 + $0x8] sm:$0xff]  }
 0x439   : > { %v865_v41 = vpop.xlane.xlu1 %864  ;;  %515 = vadd.xlane.f32.xlu0 %v514_v40  ;;  %1259 = vmatpush3.bf16.msra.mxu1 %v1371_v37 }
 0x43a   : > { %1387 = vpow2.f32 %v752_v39  ;;  %v869_v43 = vsub.f32 %v856_v12, %v865_v41  ;;  %1260 = vmatprep.subr.bf16.mxu1 %v1566_v15 }
 0x43b   : > { %v1382_v44 = vpop.eup %1381 }
 0x43c   : > { %v871_v45 = vmul.f32 1.442695, %v869_v43  ;;  %v633_v46 = vsel %vm498_vm3, %v1382_v44, 0.0  ;;  %v1372_v43 = vld [vmem:[#allocation7] sm:$0xff]  }
 0x43d   : > { %634 = vadd.xlane.f32.xlu1 %v633_v46  ;;  %v523_v47 = vpop.permute.xlu1 %522  ;;  %v868_v48 = vpop.xlane.xlu0 %867  ;;  %1261 = vmatpush3.bf16.msra.mxu1 %v1372_v43 }
 0x43e   : > { %1389 = vpow2.f32 %v871_v45  ;;  %v870_v49 = vsub.f32 %v859_v16, %v868_v48  ;;  %1217 = vmatpush3.bf16.msra.mxu0 %v523_v47 }
 0x43f   : > { %v1384_v50 = vpop.eup %1383  ;;  %1228 = vmatprep.subr.bf16.mxu0 %v1566_v15 }
 0x440   : > { %v873_v51 = vmul.f32 1.442695, %v870_v49  ;;  %v636_v52 = vsel %vm498_vm3, %v1384_v50, 0.0 }
 0x441   : > { %637 = vadd.xlane.f32.xlu0 %v636_v52 }
 0x442   : > { %1391 = vpow2.f32 %v873_v51 }
 0x443   : > { %v1386_v53 = vpop.eup %1385 }
 0x444   : > { %v754_v54 = vsel %vm498_vm3, %v1386_v53, 0.0 }
 0x445   : > { %755 = vadd.xlane.f32.xlu1 %v754_v54 }
 0x447   : > { %v1388_v55 = vpop.eup %1387 }
 0x448   : > { %v757_v56 = vsel %vm498_vm3, %v1388_v55, 0.0 }
 0x449   : > { %758 = vadd.xlane.f32.xlu0 %v757_v56 }
 0x44b   : > { %v1390_v57 = vpop.eup %1389 }
 0x44c   : > { %v875_v58 = vsel %vm498_vm3, %v1390_v57, 0.0 }
 0x44d   : > { %876 = vadd.xlane.f32.xlu1 %v875_v58 }
 0x44f   : > { %v1392_v59 = vpop.eup %1391 }
 0x450   : > { %v878_v60 = vsel %vm498_vm3, %v1392_v59, 0.0 }
 0x451   : > { %879 = vadd.xlane.f32.xlu0 %v878_v60 }
 0x45e   : > { %765 = vrot.lane.b32.xlu1 %v1797_v42, %s1576_s9  ;;  %s1874_s9 = scalar_lea.hbm %s1929_s7, %s1179_s29 }
 0x462   : > { %886 = vrot.lane.b32.xlu1 %v1797_v42, %s1577_s18  ;;  %s1582_s18 = smov [#allocation8]  }
 0x467   : > { %644 = vrot.lane.b32.xlu0 %v1797_v42, %s1578_s20  ;;  %s1493_s20 = sshll.u32 %s1582_s18, 4  ;;  %s1494_s20 = int_to_ptr.vmem [resolvable:$false] %s1493_s20 }
 0x468   : > { %p1496_p6 = scmp.lt.s32.totalorder %s1877_s16, %s1494_s20 }
 0x4be   : > { %v513_v61 = vpop.xlane.xlu1 %512 }
 0x4bf   : > { %1393 = vrcp.f32 %v513_v61 }
 0x4c2   : > { %v516_v62 = vpop.xlane.xlu0 %515 }
 0x4c3   : > { %1395 = vrcp.f32 %v516_v62 }
 0x4c6   : > { %v635_v2 = vpop.xlane.xlu1 %634 }
 0x4ca   : > { %v638_v63 = vpop.xlane.xlu0 %637 }
 0x4cb   : > { %1397 = vrcp.f32 %v638_v63 }
 0x4cc   : > { %v1394_v3 = vpop.eup %1393  ;;  %1399 = vrcp.f32 %v635_v2 }
 0x4cd   : > { %v518_v5 = vmul.f32 %v1394_v3, %v1378_v33 }
 0x4ce   : > { %v756_v8 = vpop.xlane.xlu1 %755 }
 0x4d0   : > { %v1396_v4 = vpop.eup %1395 }
 0x4d1   : > { %v520_v6 = vmul.f32 %v1396_v4, %v1380_v38 }
 0x4d2   : > { %v759_v7 = vpop.xlane.xlu0 %758 }
 0x4d3   : > { %v521_v9 = vpack.c.bf16 %v520_v6, %v518_v5  ;;  %1401 = vrcp.f32 %v759_v7  ;;  %v1169_v5 = vld [vmem:[%s1928_s6] ss:$0 sm:$0xff] }
 0x4d4   : > { %1403 = vrcp.f32 %v756_v8 }
 0x4d5   : > { %1219 = vmatmul.mubr.msk.bf16.vlgmr.msra.gmra.mxu0 %vm498_vm3, %v521_v9 }
 0x4d6   : > { %1230 = vmatprep.mubr.msk.bf16.mxu0 %vm1567_vm1, %v1566_v15  ;;  %v877_v12 = vpop.xlane.xlu1 %876 }
 0x4d8   : > { %v1398_v42 = vpop.eup %1397 }
 0x4d9   : > { %v1400_v11 = vpop.eup %1399  ;;  %v642_v13 = vmul.f32 %v1398_v42, %v1384_v50 }
 0x4da   : > { %v880_v10 = vpop.xlane.xlu0 %879  ;;  %v640_v16 = vmul.f32 %v1400_v11, %v1382_v44  ;;  %v766_v19 = vpop.permute.xlu1 %765 }
 0x4db   : > { %1405 = vrcp.f32 %v880_v10 }
 0x4dc   : > { %1407 = vrcp.f32 %v877_v12  ;;  %v643_v17 = vpack.c.bf16 %v642_v13, %v640_v16 }
 0x4de   : > { %v645_v14 = vpop.permute.xlu0 %644  ;;  %v887_v25 = vpop.permute.xlu1 %886 }
 0x4df   : > { %1229 = vmatpush3.bf16.msra.mxu0 %v645_v14 }
 0x4e0   : > { %1240 = vmatprep.subr.bf16.mxu0 %v1566_v15  ;;  %v1402_v18 = vpop.eup %1401 }
 0x4e1   : > { %v1404_v20 = vpop.eup %1403  ;;  %v763_v21 = vmul.f32 %v1402_v18, %v1388_v55 }
 0x4e2   : > { %1231 = vmatmul.mubr.msk.bf16.vlgmr.msra.gmra.mxu0 %vm498_vm3, %v643_v17  ;;  %v761_v22 = vmul.f32 %v1404_v20, %v1386_v53 }
 0x4e3   : > { %1241 = vmatpush3.bf16.msra.mxu0 %v766_v19  ;;  %1242 = vmatprep.mubr.msk.bf16.mxu0 %vm1567_vm1, %v1566_v15 }
 0x4e4   : > { %1252 = vmatprep.subr.bf16.mxu0 %v1566_v15  ;;  %v764_v23 = vpack.c.bf16 %v763_v21, %v761_v22 }
 0x4e8   : > { %v1406_v24 = vpop.eup %1405 }
 0x4e9   : > { %v1408_v26 = vpop.eup %1407  ;;  %v884_v27 = vmul.f32 %v1406_v24, %v1392_v59 }
 0x4ea   : > { %1243 = vmatmul.mubr.msk.bf16.vlgmr.msra.gmra.mxu0 %vm498_vm3, %v764_v23  ;;  %v882_v28 = vmul.f32 %v1408_v26, %v1390_v57 }
 0x4eb   : > { %1253 = vmatpush3.bf16.msra.mxu0 %v887_v25  ;;  %1254 = vmatprep.mubr.msk.bf16.mxu0 %vm1567_vm1, %v1566_v15 }
 0x4ec   : > { %v885_v29 = vpack.c.bf16 %v884_v27, %v882_v28 }
 0x4f2   : > { %1255 = vmatmul.mubr.msk.bf16.vlgmr.msra.gmra.mxu0 %vm498_vm3, %v885_v29 }
 0x595   : > { %v562_v30 = vpop.f32.mrf.mxu0 }
 0x597   : > { %v1220_v31 = vpop.f32.mrf.mxu0 }
 0x599   : > { %v565_v32 = vpop.f32.mrf.mxu0 }
 0x59b   : > { %v1221_v33 = vpop.f32.mrf.mxu0 }
 0x5a2   : > { %v684_v34 = vpop.f32.mrf.mxu0 }
 0x5a4   : > { %v1232_v35 = vpop.f32.mrf.mxu0 }
 0x5a6   : > { %v687_v36 = vpop.f32.mrf.mxu0 }
 0x5a7   : > { %v1354_v38 = vpack.i.bf16 %v687_v36, %v684_v34 }
 0x5a8   : > { %v1233_v39 = vpop.f32.mrf.mxu0 }
 0x5a9   : > { %1355 = vrot.lane.b32.xlu1 %v1354_v38, %s1579_s21 }
 0x5aa   : > { %v805_v40 = vpop.f32.mrf.mxu0 }
 0x5ac   : > { %v1244_v41 = vpop.f32.mrf.mxu0 }
 0x5ae   : > { %v808_v44 = vpop.f32.mrf.mxu0 }
 0x5af   : > { %v1359_v45 = vpack.i.bf16 %v808_v44, %v805_v40 }
 0x5b0   : > { %v1245_v46 = vpop.f32.mrf.mxu0 }
 0x5b1   : > { %1360 = vrot.lane.b32.xlu0 %v1359_v45, %s1580_s22  ;;  %s1495_s22 = scalar_lea.vmem %s1494_s20, 512 }
 0x5b2   : > { %v926_v47 = vpop.f32.mrf.mxu0  ;;  %p1497_p12 = scmp.lt.s32.totalorder %s1495_s22, %s1489_s3 }
 0x5b4   : > { %v1256_v48 = vpop.f32.mrf.mxu0  ;;  %p1498_p7 = por %p1497_p12, %p1496_p6 }
 0x5b6   : > { %v929_v49 = vpop.f32.mrf.mxu0  ;;  %p1499_p9 = pnand %p1498_p7, %p1492_p2 }
 0x5b7   : > { %v1364_v50 = vpack.i.bf16 %v929_v49, %v926_v47 }
 0x5b8   : > { %v1257_v51 = vpop.f32.mrf.mxu0 }
 0x5b9   : > { %1365 = vrot.lane.b32.xlu1 %v1364_v50, %s1581_s13 }
 0x61b   : > { %v1356_v52 = vpop.permute.xlu1 %1355 }
 0x61c   : > { %v1358_v54 = vunpack.i.h.bf16 %v1356_v52  ;;  %v1357_v15 = vunpack.i.l.bf16 %v1356_v52 }
 0x61e   : > { %v958_v58 = vsel %vm450_vm2, %v565_v32, %v1358_v54  ;;  %v957_v59 = vsel %vm450_vm2, %v562_v30, %v1357_v15 }
 0x623   : > { %v1361_v53 = vpop.permute.xlu0 %1360 }
 0x624   : > { %v1363_v55 = vunpack.i.h.bf16 %v1361_v53  ;;  %v1362_v56 = vunpack.i.l.bf16 %v1361_v53 }
 0x626   : > { %v960_v62 = vsel %vm498_vm3, %v958_v58, %v1363_v55  ;;  %v959_v63 = vsel %vm498_vm3, %v957_v59, %v1362_v56 }
 0x62b   : > { %v1366_v57 = vpop.permute.xlu1 %1365 }
 0x62c   : > { %v1368_v60 = vunpack.i.h.bf16 %v1366_v57  ;;  %v1367_v61 = vunpack.i.l.bf16 %v1366_v57 }
 0x62e   : > { %v963_v2 = vsel %vm961_vm4, %v960_v62, %v1368_v60  ;;  %v962_v3 = vsel %vm961_vm4, %v959_v63, %v1367_v61 }
 0x62f   : > { %v964_v4 = vpack.c.bf16 %v963_v2, %v962_v3 }
 0x631   : > { %1263 = vmatmul.mubr.msk.bf16.vlgmr.msra.gmra.mxu1 %vm329_vm0, %v964_v4 }
 0x6f1   : > { %v1025_v6 = vpop.f32.mrf.mxu1 }
 0x6f2   : > { %v1026_v7 = vadd.f32 %v1169_v5, %v1025_v6 }
 0x6f3   : > { %v1264_v8 = vpop.f32.mrf.mxu1 }
 0x6f4   : > { %v1032_v9 = vadd.f32 %v1026_v7, %v1765_v0 }
 0x6f5   : > { %v1028_v42 = vpop.f32.mrf.mxu1 }
 0x6f6   : > { %1034 = vst.msk [vmem:[%s325_s14] sm:$0xff] %vm329_vm0, %v1032_v9  ;;  %v1029_v10 = vadd.f32 %v1169_v5, %v1028_v42 }
 0x6f7   : > { %v1265_v11 = vpop.f32.mrf.mxu1 }
 0x6f8   : > { %v1033_v12 = vadd.f32 %v1029_v10, %v1767_v1 }
 0x6fa   : > { %1035 = vst.msk [vmem:[%s325_s14 + $0x8] sm:$0xff] %vm329_vm0, %v1033_v12 }
 0x6fb   : > { %1502 = shalt.err (!%p1499_p9)
}
 0x6fc   : > { %s1503_s13 = scalar_lea.hbm %s1874_s9, 256  ;;  %s1507_s29 = scalar_lea.hbm %s1929_s7, 512 }
 0x6fd   : > { %p1504_p13 = scmp.ne.s32.totalorder %s1874_s9, %s1503_s13  ;;  %p1508_p4 = scmp.lt.s32.totalorder %s1874_s9, %s1929_s7 }
 0x6fe   : > { %p1509_p8 = scmp.lt.s32.totalorder %s1507_s29, %s1503_s13 }
 0x6ff   : > { %p1505_p5 = pnand %p1504_p13, %p1947_p10 }
 0x700   : > { %p1510_p3 = por %p1509_p8, %p1508_p4 }
 0x701   : > { %p1506_p0 = pneg %p1505_p5 }
 0x703   : > { %p1511_p11 = pnand %p1510_p3, %p1506_p0 }
 0x705   : > { %1514 = shalt.err (!%p1511_p11)
}
 0x706   : > { %s1583_s30 = smov 128  }
 0x707   : > { %1276 = dma.vmem_to_hbm [thread:$0]  (%p1947_p10), %s1877_s16, 256, %s1874_s9, %s1037_s28, %s1583_s30, %s1583_s30, %s1579_s21  }
 0x708 PF: > { %s1065_s3 = sand.u32 1, %s1545_s24   ;;  %p1948_p1 = scmp.ne.s32.totalorder %s1936_s8, 0 }
 0x709   : > { %p1949_p2 = scmp.ge.s32.totalorder %s1557_s27, 2  ;;  %s1066_s18 = scalar_lea.sflag [#allocation4], %s1065_s3 }
 0x70b   : > { %p1290_p6 = pnand %p1949_p2, %p1948_p1 }
 0x70d   : > { %p1291_p12 = pneg %p1290_p6 }
 0x70f   : > { %1540 = dma.done.wait (%p1291_p12), %s1066_s18, 256  }
 0x710   : > { %1542 = vsyncadd (%p1291_p12), %s1066_s18, 4294967040  ;;  %p21_p7 = scmp.ge.s32.totalorder %s1696_s23, 4   ;;  %s1950_s24 = smov %s1549_s25 }
 0x711   : > { %s1951_s25 = smov %s1553_s26  ;;  %s1952_s26 = smov %s1712_s12 }
 0x712   : > { %s1953_s27 = smov %s1696_s23  ;;  %23 = sbr.rel (!%p21_p7) target bundleno = 8 (0x8), region = 101 }
 0x717   :  { %1071 = vsyncpa [#allocation3], 1 }
 0x718   :  { %1073 = vsyncpa [#allocation3 + $0x1], 1 }
 0x719   :  { %1074 = vsyncpa [#allocation6], 1 }
 0x71a   :  { %1075 = vsyncpa [#allocation4], 1 }
 0x71b   :  { %1077 = vsyncpa [#allocation4 + $0x1], 1 }

</bundles_post_ra>
